<compile_context>
chip_gen: v5e
topology: v5e:2x2
jax: 0.10.0
libtpu: 0.0.40
codegen_flags: <defaults>
</compile_context>

<pallas_src>
import jax
import jax.numpy as jnp
from jax.experimental import pallas as pl
from jax.experimental.pallas import tpu as pltpu

D_PAD = 128     # lane-dense padded input feature width
OUT_PAD = 128   # lane-dense padded head output width (lane 0 = q1, lane 1 = q2)


def qnetwork_kernel(x_ref, w1_ref, b1_ref,
                    w2a_ref, b2a_ref, w2b_ref, b2b_ref,
                    wha_ref, whb_ref, bh_ref, out_ref):
    hid = w2a_ref.shape[0]

    # Fused layer 1 (q1 | q2): [TB,128]bf16 @ [128,512]bf16 -> f32 acc.
    x = x_ref[...]
    h = jnp.dot(x, w1_ref[...], preferred_element_type=jnp.float32) + b1_ref[...]
    h = jnp.maximum(h, 0.0).astype(jnp.bfloat16)          # [TB, 512]
    h1 = h[:, :hid]                                       # q1 hidden
    h2 = h[:, hid:]                                       # q2 hidden

    # Layer 2, per-network 256x256 matmuls.
    g1 = jnp.dot(h1, w2a_ref[...], preferred_element_type=jnp.float32) + b2a_ref[...]
    g1 = jnp.maximum(g1, 0.0).astype(jnp.bfloat16)
    g2 = jnp.dot(h2, w2b_ref[...], preferred_element_type=jnp.float32) + b2b_ref[...]
    g2 = jnp.maximum(g2, 0.0).astype(jnp.bfloat16)

    # Fused lane-dense head: q1 lands in lane 0, q2 in lane 1 of a [TB,128] slab.
    out_ref[...] = (jnp.dot(g1, wha_ref[...], preferred_element_type=jnp.float32)
                    + jnp.dot(g2, whb_ref[...], preferred_element_type=jnp.float32)
                    + bh_ref[...])


def qnetwork_forward(state, action, params, *, tb=None):
    """Run the QNetwork forward pass (both Q heads) in one Pallas kernel."""
    (w1a, b1a, w2a, b2a, w3a, b3a,
     w1b, b1b, w2b, b2b, w3b, b3b) = params
    hidden = w2a.shape[0]

    x = jnp.concatenate([state, action], axis=1).astype(jnp.float32)
    B, d_in = x.shape

    # Lane-dense, zero-padded input tile (zero rows in W1 make padding inert).
    x_pad = jnp.zeros((B, D_PAD), jnp.float32).at[:, :d_in].set(x)

    # Fuse first layers of q1 and q2 along the output axis; pad K to D_PAD.
    w1_f = jnp.zeros((D_PAD, 2 * hidden), jnp.float32)
    w1_f = w1_f.at[:d_in, :hidden].set(w1a).at[:d_in, hidden:].set(w1b)
    b1_f = jnp.concatenate([b1a, b1b], axis=1)                       # (1, 512)

    # Lane-dense fused head weights: q1 -> lane 0 (g1 path), q2 -> lane 1 (g2 path).
    wha = jnp.zeros((hidden, OUT_PAD), jnp.float32).at[:, 0].set(w3a[:, 0])
    whb = jnp.zeros((hidden, OUT_PAD), jnp.float32).at[:, 1].set(w3b[:, 0])
    bh = jnp.zeros((1, OUT_PAD), jnp.float32)
    bh = bh.at[0, 0].set(b3a[0, 0]).at[0, 1].set(b3b[0, 0])

    # bf16 operands for the MXU; biases / accumulation / clamp stay f32.
    x_bf = x_pad.astype(jnp.bfloat16)
    w1_bf = w1_f.astype(jnp.bfloat16)
    w2a_bf = w2a.astype(jnp.bfloat16)
    w2b_bf = w2b.astype(jnp.bfloat16)
    wha_bf = wha.astype(jnp.bfloat16)
    whb_bf = whb.astype(jnp.bfloat16)

    # Batch tiling: TB capped at 256 (v7x VMEM-safe), padded to a multiple of TB.
    if tb is None:
        tb = 256 if B >= 256 else max(8, ((B + 7) // 8) * 8)
    b_pad = ((B + tb - 1) // tb) * tb
    if b_pad != B:
        x_bf = jnp.zeros((b_pad, D_PAD), jnp.bfloat16).at[:B].set(x_bf)

    resident = lambda i: (0, 0)   # weights stay VMEM-resident across the grid
    out = pl.pallas_call(
        qnetwork_kernel,
        out_shape=jax.ShapeDtypeStruct((b_pad, OUT_PAD), jnp.float32),
        grid_spec=pltpu.PrefetchScalarGridSpec(
            num_scalar_prefetch=0,
            grid=(b_pad // tb,),
            in_specs=[
                pl.BlockSpec((tb, D_PAD), lambda i: (i, 0)),        # x tile
                pl.BlockSpec((D_PAD, 2 * hidden), resident),        # fused W1
                pl.BlockSpec((1, 2 * hidden), resident),            # fused b1
                pl.BlockSpec((hidden, hidden), resident),           # W2 (q1)
                pl.BlockSpec((1, hidden), resident),                # b2 (q1)
                pl.BlockSpec((hidden, hidden), resident),           # W2 (q2)
                pl.BlockSpec((1, hidden), resident),                # b2 (q2)
                pl.BlockSpec((hidden, OUT_PAD), resident),          # head W (q1)
                pl.BlockSpec((hidden, OUT_PAD), resident),          # head W (q2)
                pl.BlockSpec((1, OUT_PAD), resident),               # head bias
            ],
            out_specs=pl.BlockSpec((tb, OUT_PAD), lambda i: (i, 0)),
        ),
        compiler_params=pltpu.CompilerParams(
            dimension_semantics=("parallel",)),
    )(x_bf, w1_bf, b1_f, w2a_bf, b2a, w2b_bf, b2b, wha_bf, whb_bf, bh)

    q1 = out[:B, 0:1]
    q2 = out[:B, 1:2]
    return q1, q2


def init_linear(key, in_features, out_features):
    """PyTorch weights_init_: kaiming_uniform_(relu) weights, zero bias.

    W is stored transposed vs PyTorch, shape (in_features, out_features);
    bias is (1, out_features) for clean 2-D broadcast on TPU.
    """
    bound = jnp.sqrt(6.0 / jnp.float32(in_features))   # gain(relu)*sqrt(3/fan_in)
    w = jax.random.uniform(key, (in_features, out_features), jnp.float32,
                           minval=-bound, maxval=bound)
    b = jnp.zeros((1, out_features), jnp.float32)
    return w, b


def _mlp_bf16(x, w1, b1, w2, b2, w3, b3):
    h = jnp.maximum(jnp.dot(x, w1.astype(jnp.bfloat16),
                            preferred_element_type=jnp.float32) + b1, 0.0)
    h = h.astype(jnp.bfloat16)
    h = jnp.maximum(jnp.dot(h, w2.astype(jnp.bfloat16),
                            preferred_element_type=jnp.float32) + b2, 0.0)
    h = h.astype(jnp.bfloat16)
    return jnp.dot(h, w3.astype(jnp.bfloat16),
                   preferred_element_type=jnp.float32) + b3


def reference_forward_bf16(state, action, params):
    """Plain-JAX reference matching the kernel's bf16-compute / f32-accumulate."""
    (w1a, b1a, w2a, b2a, w3a, b3a,
     w1b, b1b, w2b, b2b, w3b, b3b) = params
    x = jnp.concatenate([state, action], axis=1).astype(jnp.bfloat16)
    return (_mlp_bf16(x, w1a, b1a, w2a, b2a, w3a, b3a),
            _mlp_bf16(x, w1b, b1b, w2b, b2b, w3b, b3b))


def reference_forward_f32(state, action, params):
    """Full-precision reference of the PyTorch forward() (intended semantics)."""
    (w1a, b1a, w2a, b2a, w3a, b3a,
     w1b, b1b, w2b, b2b, w3b, b3b) = params
    x = jnp.concatenate([state, action], axis=1)
    h1 = jnp.maximum(x @ w1a + b1a, 0.0)
    h1 = jnp.maximum(h1 @ w2a + b2a, 0.0)
    q1 = h1 @ w3a + b3a
    h2 = jnp.maximum(x @ w1b + b1b, 0.0)
    h2 = jnp.maximum(h2 @ w2b + b2b, 0.0)
    q2 = h2 @ w3b + b3b
    return q1, q2


if __name__ == "__main__":
    key = jax.random.PRNGKey(0)
    keys = jax.random.split(key, 8)

    batch = 8
    state_dim = 18        # hard-coded in the module's layer_sizes
    action_dim = 4
    hidden = 256
    d_in = state_dim + action_dim

    state = jax.random.normal(keys[0], (batch, state_dim), jnp.float32)
    action = jax.random.normal(keys[1], (batch, action_dim), jnp.float32)

    params = (
        *init_linear(keys[2], d_in, hidden),     # q1 layer 0
        *init_linear(keys[3], hidden, hidden),   # q1 layer 1
        *init_linear(keys[4], hidden, 1),        # q1 head
        *init_linear(keys[5], d_in, hidden),     # q2 layer 0
        *init_linear(keys[6], hidden, hidden),   # q2 layer 1
        *init_linear(keys[7], hidden, 1),        # q2 head
    )

    q1, q2 = qnetwork_forward(state, action, params)
    jax.block_until_ready((q1, q2))

    assert q1.shape == (batch, 1) and q2.shape == (batch, 1)

    # Faithful check against a bf16-compute reference (same rounding as kernel).
    r1, r2 = reference_forward_bf16(state, action, params)
    assert jnp.allclose(q1, r1, atol=1e-3, rtol=1e-3)
    assert jnp.allclose(q2, r2, atol=1e-3, rtol=1e-3)

    # Sanity check against the full-f32 module semantics (bf16 weights tolerance).
    f1, f2 = reference_forward_f32(state, action, params)
    assert float(jnp.max(jnp.abs(q1 - f1))) < 0.1
    assert float(jnp.max(jnp.abs(q2 - f2))) < 0.1

    # TODO(synk): compute_loss / Adam optimizer / LR scheduler are training-side
    # utilities, not part of forward(); only forward() is kernelized.
    print("KERNEL_OK")
</pallas_src>

<mosaic_0001>
module attributes {stable_mosaic.version = 11 : i64} {
  func.func @qnetwork_kernel(%arg0: i32, %arg1: memref<8x128xbf16, #tpu.memory_space<vmem>>, %arg2: memref<128x512xbf16, #tpu.memory_space<vmem>>, %arg3: memref<1x512xf32, #tpu.memory_space<vmem>>, %arg4: memref<256x256xbf16, #tpu.memory_space<vmem>>, %arg5: memref<1x256xf32, #tpu.memory_space<vmem>>, %arg6: memref<256x256xbf16, #tpu.memory_space<vmem>>, %arg7: memref<1x256xf32, #tpu.memory_space<vmem>>, %arg8: memref<256x128xbf16, #tpu.memory_space<vmem>>, %arg9: memref<256x128xbf16, #tpu.memory_space<vmem>>, %arg10: memref<1x128xf32, #tpu.memory_space<vmem>>, %arg11: memref<8x128xf32, #tpu.memory_space<vmem>>) attributes {dimension_semantics = [#tpu.dimension_semantics<parallel>], iteration_bounds = array<i64: 1>, scalar_prefetch = 0 : i64, scratch_operands = 0 : i64, tpu.core_type = #tpu.core_type<tc>, window_params = [{transform_indices = @transform_0, window_bounds = array<i64: 8, 128>}, {pipeline_mode = #tpu.pipeline_mode<synchronous>, transform_indices = @transform_1, window_bounds = array<i64: 128, 512>}, {pipeline_mode = #tpu.pipeline_mode<synchronous>, transform_indices = @transform_2, window_bounds = array<i64: 1, 512>}, {pipeline_mode = #tpu.pipeline_mode<synchronous>, transform_indices = @transform_3, window_bounds = array<i64: 256, 256>}, {pipeline_mode = #tpu.pipeline_mode<synchronous>, transform_indices = @transform_4, window_bounds = array<i64: 1, 256>}, {pipeline_mode = #tpu.pipeline_mode<synchronous>, transform_indices = @transform_5, window_bounds = array<i64: 256, 256>}, {pipeline_mode = #tpu.pipeline_mode<synchronous>, transform_indices = @transform_6, window_bounds = array<i64: 1, 256>}, {pipeline_mode = #tpu.pipeline_mode<synchronous>, transform_indices = @transform_7, window_bounds = array<i64: 256, 128>}, {pipeline_mode = #tpu.pipeline_mode<synchronous>, transform_indices = @transform_8, window_bounds = array<i64: 256, 128>}, {pipeline_mode = #tpu.pipeline_mode<synchronous>, transform_indices = @transform_9, window_bounds = array<i64: 1, 128>}, {transform_indices = @transform_10, window_bounds = array<i64: 8, 128>}]} {
    %c0 = arith.constant 0 : index
    %c0_0 = arith.constant 0 : index
    %0 = vector.load %arg1[%c0, %c0_0] : memref<8x128xbf16, #tpu.memory_space<vmem>>, vector<8x128xbf16>
    %c0_1 = arith.constant 0 : index
    %c0_2 = arith.constant 0 : index
    %1 = vector.load %arg2[%c0_1, %c0_2] : memref<128x512xbf16, #tpu.memory_space<vmem>>, vector<128x512xbf16>
    %cst = arith.constant dense<0.000000e+00> : vector<8x512xf32>
    %2 = tpu.matmul %0, %1, %cst {dimension_numbers = #tpu.dot_dimension_numbers<[1], [0], [0], [1], [0, 0, 1, 1], [], []>} : vector<8x128xbf16>, vector<128x512xbf16>, vector<8x512xf32> -> vector<8x512xf32>
    %c0_3 = arith.constant 0 : index
    %c0_4 = arith.constant 0 : index
    %3 = vector.load %arg3[%c0_3, %c0_4] : memref<1x512xf32, #tpu.memory_space<vmem>>, vector<1x512xf32>
    %4 = vector.broadcast %3 : vector<1x512xf32> to vector<8x512xf32>
    %5 = arith.addf %2, %4 : vector<8x512xf32>
    %cst_5 = arith.constant 0.000000e+00 : f32
    %6 = vector.broadcast %cst_5 : f32 to vector<8x512xf32>
    %7 = arith.maximumf %5, %6 : vector<8x512xf32>
    %8 = arith.truncf %7 : vector<8x512xf32> to vector<8x512xbf16>
    %9 = vector.extract_strided_slice %8 {offsets = [0, 0], sizes = [8, 256], strides = [1, 1]} : vector<8x512xbf16> to vector<8x256xbf16>
    %10 = vector.extract_strided_slice %8 {offsets = [0, 256], sizes = [8, 256], strides = [1, 1]} : vector<8x512xbf16> to vector<8x256xbf16>
    %c0_6 = arith.constant 0 : index
    %c0_7 = arith.constant 0 : index
    %11 = vector.load %arg4[%c0_6, %c0_7] : memref<256x256xbf16, #tpu.memory_space<vmem>>, vector<256x256xbf16>
    %cst_8 = arith.constant dense<0.000000e+00> : vector<8x256xf32>
    %12 = tpu.matmul %9, %11, %cst_8 {dimension_numbers = #tpu.dot_dimension_numbers<[1], [0], [0], [1], [0, 0, 1, 1], [], []>} : vector<8x256xbf16>, vector<256x256xbf16>, vector<8x256xf32> -> vector<8x256xf32>
    %c0_9 = arith.constant 0 : index
    %c0_10 = arith.constant 0 : index
    %13 = vector.load %arg5[%c0_9, %c0_10] : memref<1x256xf32, #tpu.memory_space<vmem>>, vector<1x256xf32>
    %14 = vector.broadcast %13 : vector<1x256xf32> to vector<8x256xf32>
    %15 = arith.addf %12, %14 : vector<8x256xf32>
    %cst_11 = arith.constant 0.000000e+00 : f32
    %16 = vector.broadcast %cst_11 : f32 to vector<8x256xf32>
    %17 = arith.maximumf %15, %16 : vector<8x256xf32>
    %18 = arith.truncf %17 : vector<8x256xf32> to vector<8x256xbf16>
    %c0_12 = arith.constant 0 : index
    %c0_13 = arith.constant 0 : index
    %19 = vector.load %arg6[%c0_12, %c0_13] : memref<256x256xbf16, #tpu.memory_space<vmem>>, vector<256x256xbf16>
    %cst_14 = arith.constant dense<0.000000e+00> : vector<8x256xf32>
    %20 = tpu.matmul %10, %19, %cst_14 {dimension_numbers = #tpu.dot_dimension_numbers<[1], [0], [0], [1], [0, 0, 1, 1], [], []>} : vector<8x256xbf16>, vector<256x256xbf16>, vector<8x256xf32> -> vector<8x256xf32>
    %c0_15 = arith.constant 0 : index
    %c0_16 = arith.constant 0 : index
    %21 = vector.load %arg7[%c0_15, %c0_16] : memref<1x256xf32, #tpu.memory_space<vmem>>, vector<1x256xf32>
    %22 = vector.broadcast %21 : vector<1x256xf32> to vector<8x256xf32>
    %23 = arith.addf %20, %22 : vector<8x256xf32>
    %cst_17 = arith.constant 0.000000e+00 : f32
    %24 = vector.broadcast %cst_17 : f32 to vector<8x256xf32>
    %25 = arith.maximumf %23, %24 : vector<8x256xf32>
    %26 = arith.truncf %25 : vector<8x256xf32> to vector<8x256xbf16>
    %c0_18 = arith.constant 0 : index
    %c0_19 = arith.constant 0 : index
    %27 = vector.load %arg8[%c0_18, %c0_19] : memref<256x128xbf16, #tpu.memory_space<vmem>>, vector<256x128xbf16>
    %cst_20 = arith.constant dense<0.000000e+00> : vector<8x128xf32>
    %28 = tpu.matmul %18, %27, %cst_20 {dimension_numbers = #tpu.dot_dimension_numbers<[1], [0], [0], [1], [0, 0, 1, 1], [], []>} : vector<8x256xbf16>, vector<256x128xbf16>, vector<8x128xf32> -> vector<8x128xf32>
    %c0_21 = arith.constant 0 : index
    %c0_22 = arith.constant 0 : index
    %29 = vector.load %arg9[%c0_21, %c0_22] : memref<256x128xbf16, #tpu.memory_space<vmem>>, vector<256x128xbf16>
    %cst_23 = arith.constant dense<0.000000e+00> : vector<8x128xf32>
    %30 = tpu.matmul %26, %29, %cst_23 {dimension_numbers = #tpu.dot_dimension_numbers<[1], [0], [0], [1], [0, 0, 1, 1], [], []>} : vector<8x256xbf16>, vector<256x128xbf16>, vector<8x128xf32> -> vector<8x128xf32>
    %31 = arith.addf %28, %30 : vector<8x128xf32>
    %c0_24 = arith.constant 0 : index
    %c0_25 = arith.constant 0 : index
    %32 = vector.load %arg10[%c0_24, %c0_25] : memref<1x128xf32, #tpu.memory_space<vmem>>, vector<1x128xf32>
    %33 = vector.broadcast %32 : vector<1x128xf32> to vector<8x128xf32>
    %34 = arith.addf %31, %33 : vector<8x128xf32>
    %c0_26 = arith.constant 0 : index
    %c0_27 = arith.constant 0 : index
    %35 = vector.load %arg11[%c0_26, %c0_27] : memref<8x128xf32, #tpu.memory_space<vmem>>, vector<8x128xf32>
    tpu.vector_store %arg11[%c0_26, %c0_27], %34 {strides = array<i32>} : memref<8x128xf32, #tpu.memory_space<vmem>>, vector<8x128xf32>,
    return
  }
  func.func @transform_0(%arg0: i32) -> (i32, i32) {
    %c0_i32 = arith.constant 0 : i32
    %c0_i32_0 = arith.constant 0 : i32
    return %arg0, %c0_i32 : i32, i32
  }
  func.func @transform_1(%arg0: i32) -> (i32, i32) {
    %c0_i32 = arith.constant 0 : i32
    %c0_i32_0 = arith.constant 0 : i32
    %c0_i32_1 = arith.constant 0 : i32
    return %c0_i32, %c0_i32_0 : i32, i32
  }
  func.func @transform_2(%arg0: i32) -> (i32, i32) {
    %c0_i32 = arith.constant 0 : i32
    %c0_i32_0 = arith.constant 0 : i32
    %c0_i32_1 = arith.constant 0 : i32
    return %c0_i32, %c0_i32_0 : i32, i32
  }
  func.func @transform_3(%arg0: i32) -> (i32, i32) {
    %c0_i32 = arith.constant 0 : i32
    %c0_i32_0 = arith.constant 0 : i32
    %c0_i32_1 = arith.constant 0 : i32
    return %c0_i32, %c0_i32_0 : i32, i32
  }
  func.func @transform_4(%arg0: i32) -> (i32, i32) {
    %c0_i32 = arith.constant 0 : i32
    %c0_i32_0 = arith.constant 0 : i32
    %c0_i32_1 = arith.constant 0 : i32
    return %c0_i32, %c0_i32_0 : i32, i32
  }
  func.func @transform_5(%arg0: i32) -> (i32, i32) {
    %c0_i32 = arith.constant 0 : i32
    %c0_i32_0 = arith.constant 0 : i32
    %c0_i32_1 = arith.constant 0 : i32
    return %c0_i32, %c0_i32_0 : i32, i32
  }
  func.func @transform_6(%arg0: i32) -> (i32, i32) {
    %c0_i32 = arith.constant 0 : i32
    %c0_i32_0 = arith.constant 0 : i32
    %c0_i32_1 = arith.constant 0 : i32
    return %c0_i32, %c0_i32_0 : i32, i32
  }
  func.func @transform_7(%arg0: i32) -> (i32, i32) {
    %c0_i32 = arith.constant 0 : i32
    %c0_i32_0 = arith.constant 0 : i32
    %c0_i32_1 = arith.constant 0 : i32
    return %c0_i32, %c0_i32_0 : i32, i32
  }
  func.func @transform_8(%arg0: i32) -> (i32, i32) {
    %c0_i32 = arith.constant 0 : i32
    %c0_i32_0 = arith.constant 0 : i32
    %c0_i32_1 = arith.constant 0 : i32
    return %c0_i32, %c0_i32_0 : i32, i32
  }
  func.func @transform_9(%arg0: i32) -> (i32, i32) {
    %c0_i32 = arith.constant 0 : i32
    %c0_i32_0 = arith.constant 0 : i32
    %c0_i32_1 = arith.constant 0 : i32
    return %c0_i32, %c0_i32_0 : i32, i32
  }
  func.func @transform_10(%arg0: i32) -> (i32, i32) {
    %c0_i32 = arith.constant 0 : i32
    %c0_i32_0 = arith.constant 0 : i32
    return %arg0, %c0_i32 : i32, i32
  }
}

</mosaic_0001>

<bundles_post_ra>
// kernel: tpu_custom_call.1
= control target key start
LH: loop header
LB: loop body
LE: loop exit
PB: predicated region body
PF: predicated region fallthrough
CT: control target
= control target key end

     0   :  { %15 = vsyncpa [#allocation3], 0  ;;  %s2223_s0 = inlined_call_operand.hbm [shape: bf16[8,128], index: 0, kind: input, shape index: {}]   ;;  %s2224_s1 = inlined_call_operand.hbm [shape: bf16[128,512], index: 1, kind: input, shape index: {}]   ;;  %s2225_s2 = inlined_call_operand.hbm [shape: f32[1,512], index: 2, kind: input, shape index: {}]   ;;  %s2226_s3 = inlined_call_operand.hbm [shape: bf16[256,256], index: 3, kind: input, shape index: {}]   ;;  %s2227_s4 = inlined_call_operand.vmem [shape: f32[1,256], index: 4, kind: input, shape index: {}]   ;;  %s2228_s5 = inlined_call_operand.hbm [shape: bf16[256,256], index: 5, kind: input, shape index: {}]   ;;  %s2229_s6 = inlined_call_operand.vmem [shape: f32[1,256], index: 6, kind: input, shape index: {}]   ;;  %s2230_s7 = inlined_call_operand.hbm [shape: bf16[256,128], index: 7, kind: input, shape index: {}]   ;;  %s2231_s8 = inlined_call_operand.hbm [shape: bf16[256,128], index: 8, kind: input, shape index: {}]   ;;  %s2232_s9 = inlined_call_operand.vmem [shape: f32[1,128], index: 9, kind: input, shape index: {}]   ;;  %s2233_s10 = inlined_call_operand.hbm [shape: f32[8,128], index: 10, kind: output, shape index: {}]  }
   0x1   :  { %16 = vsyncpa [#allocation6], 0 }
   0x2   :  { %17 = vsyncpa [#allocation9], 0 }
   0x3   :  { %18 = vsyncpa [#allocation12], 0  ;;  %s35_s15 = sshll.u32 %s2224_s1, 4  ;;  %s36_s15 = int_to_ptr.hbm [resolvable:$true] %s35_s15 }
   0x4   :  { %19 = vsyncpa [#allocation4], 0  ;;  %s2115_s16 = smov [#allocation5]   ;;  %s59_s20 = sshll.u32 %s2226_s3, 4  ;;  %s60_s20 = int_to_ptr.hbm [resolvable:$true] %s59_s20 }
   0x5   :  { %s37_s17 = sshll.u32 %s2115_s16, 4  ;;  %s2116_s21 = smov 256   ;;  %s38_s17 = int_to_ptr.vmem [resolvable:$true] %s37_s17 }
   0x6   :  { %s2117_s22 = smov 16   ;;  %s2118_s23 = smov [#allocation8]  }
   0x7   :  { %43 = dma.hbm_to_vmem [thread:$0]  %s36_s15, 4096, %s38_s17, [#allocation6], %s2116_s21, %s2116_s21, %s2117_s22  }
   0x8   :  { %s61_s24 = sshll.u32 %s2118_s23, 4  ;;  %s2119_s25 = smov 128   ;;  %s62_s24 = int_to_ptr.vmem [resolvable:$true] %s61_s24 }
   0x9   :  { %s2120_s26 = smov 8   ;;  %s89_s28 = sshll.u32 %s2230_s7, 4  ;;  %s90_s28 = int_to_ptr.hbm [resolvable:$true] %s89_s28 }
   0xa   :  { %67 = dma.hbm_to_vmem [thread:$0]  %s60_s20, 4096, %s62_s24, [#allocation9], %s2119_s25, %s2119_s25, %s2120_s26  }
   0xb   :  { %s2121_s29 = smov [#allocation11]   ;;  %s25_s12 = sshll.u32 %s2223_s0, 4  ;;  %s26_s12 = int_to_ptr.hbm [resolvable:$true] %s25_s12 }
   0xc   :  { %s91_s3 = sshll.u32 %s2121_s29, 4  ;;  %s2122_s13 = smov 64   ;;  %s92_s3 = int_to_ptr.vmem [resolvable:$true] %s91_s3 }
   0xd   :  { %s2123_s14 = smov 4   ;;  %s2124_s15 = smov [#allocation2]  }
   0xe   :  { %97 = dma.hbm_to_vmem [thread:$0]  %s90_s28, 2048, %s92_s3, [#allocation12], %s2122_s13, %s2122_s13, %s2123_s14  }
   0xf   :  { %s27_s16 = sshll.u32 %s2124_s15, 4  ;;  %s49_s19 = sshll.u32 %s2225_s2, 4  ;;  %s28_s16 = int_to_ptr.vmem [resolvable:$true] %s27_s16  ;;  %s50_s19 = int_to_ptr.hbm [resolvable:$true] %s49_s19 }
  0x10   :  { %30 = dma.hbm_to_vmem [thread:$0]  %s26_s12, 64, %s28_s16, [#allocation3]  }
  0x11   :  { %s74_s21 = sshll.u32 %s2228_s5, 4  ;;  %s2125_s22 = smov [#allocation7]   ;;  %s75_s21 = int_to_ptr.hbm [resolvable:$true] %s74_s21 }
  0x12   :  { %s51_s23 = sshll.u32 %s2125_s22, 4  ;;  %s2126_s0 = smov [#allocation10]   ;;  %s52_s23 = int_to_ptr.vmem [resolvable:$true] %s51_s23 }
  0x13   :  { %54 = dma.hbm_to_vmem [thread:$0]  %s50_s19, 64, %s52_s23, [#allocation6]  }
  0x14   :  { %s76_s24 = sshll.u32 %s2126_s0, 4  ;;  %s102_s28 = sshll.u32 %s2231_s8, 4  ;;  %s77_s24 = int_to_ptr.vmem [resolvable:$true] %s76_s24  ;;  %s103_s28 = int_to_ptr.hbm [resolvable:$true] %s102_s28 }
  0x15   :  { %82 = dma.hbm_to_vmem [thread:$0]  %s75_s21, 4096, %s77_s24, [#allocation9], %s2119_s25, %s2119_s25, %s2120_s26  }
  0x16   :  { %s2127_s2 = smov [#allocation13]  }
  0x17   :  { %s104_s29 = sshll.u32 %s2127_s2, 4  ;;  %s105_s29 = int_to_ptr.vmem [resolvable:$true] %s104_s29 }
  0x18   :  { %110 = dma.hbm_to_vmem [thread:$0]  %s103_s28, 2048, %s105_s29, [#allocation12], %s2122_s13, %s2122_s13, %s2123_s14  }
  0x19   :  { %2105 = dma.done.wait [#allocation3], 64  }
  0x1a   :  { %2106 = vsyncadd [#allocation3], 4294967232 }
  0x1b   :  { %2107 = dma.done.wait [#allocation6], 4160  }
  0x1c   :  { %2108 = vsyncadd [#allocation6], 4294963136 }
  0x1d   :  { %2109 = dma.done.wait [#allocation9], 8192  }
  0x1e   :  { %2110 = vsyncadd [#allocation9], 4294959104 }
  0x1f   :  { %2111 = dma.done.wait [#allocation12], 4096  }
  0x20   :  { %2112 = vsyncadd [#allocation12], 4294963200  ;;  %v1372_v0 = vld [vmem:[#allocation5 + $0xe0] sm:$0xf]  ;;  %v1800_v1 = vld [vmem:[#allocation5 + $0xec] sm:$0xf0] }
  0x21   :  { %v1798_v2 = vld [vmem:[#allocation5 + $0xe4] sm:$0xf]  ;;  %v1373_v3 = vor.u32 %v1800_v1, %v1372_v0  ;;  %v1374_v4 = vld [vmem:[#allocation5 + $0xf0] sm:$0xf0]  ;;  %v1380_v5 = vld [vmem:[#allocation5 + $0xe8] sm:$0xf] }
  0x22   :  { %v1801_v6 = vld [vmem:[#allocation5 + $0xf4] sm:$0xf0]  ;;  %v1377_v7 = vor.u32 %v1798_v2, %v1374_v4  ;;  %v1799_v9 = vld [vmem:[#allocation5 + $0xec] sm:$0xf]  ;;  %v1382_v10 = vld [vmem:[#allocation5 + $0xf8] sm:$0xf0] }
  0x23   :  { %v1381_v8 = vor.u32 %v1801_v6, %v1380_v5  ;;  %v1356_v11 = vld [vmem:[#allocation5 + $0xc0] sm:$0xf]  ;;  %344 = vmatpush.bf16.msra.mxu0 %v1373_v3  ;;  %v1385_v12 = vor.u32 %v1799_v9, %v1382_v10  ;;  %v1796_v13 = vld [vmem:[#allocation5 + $0xcc] sm:$0xf0]  ;;  %v1794_v14 = vld [vmem:[#allocation5 + $0xc4] sm:$0xf] }
  0x24   :  { %v1358_v15 = vld [vmem:[#allocation5 + $0xd0] sm:$0xf0]  ;;  %357 = vmatpush.bf16.msra.mxu1 %v1377_v7  ;;  %v1357_v16 = vor.u32 %v1796_v13, %v1356_v11  ;;  %v1364_v18 = vld [vmem:[#allocation5 + $0xc8] sm:$0xf]  ;;  %v1797_v19 = vld [vmem:[#allocation5 + $0xd4] sm:$0xf0] }
  0x25   :  { %370 = vmatpush.bf16.msra.mxu2 %v1381_v8  ;;  %v1361_v17 = vor.u32 %v1794_v14, %v1358_v15  ;;  %v1795_v20 = vld [vmem:[#allocation5 + $0xcc] sm:$0xf]  ;;  %383 = vmatpush.bf16.msra.mxu3 %v1385_v12  ;;  %v1365_v21 = vor.u32 %v1797_v19, %v1364_v18  ;;  %v1366_v22 = vld [vmem:[#allocation5 + $0xd8] sm:$0xf0]  ;;  %v1340_v23 = vld [vmem:[#allocation5 + $0xa0] sm:$0xf] }
  0x26   :  { %v1792_v24 = vld [vmem:[#allocation5 + $0xac] sm:$0xf0]  ;;  %v1369_v25 = vor.u32 %v1795_v20, %v1366_v22  ;;  %v1790_v26 = vld [vmem:[#allocation5 + $0xa4] sm:$0xf]  ;;  %v1342_v27 = vld [vmem:[#allocation5 + $0xb0] sm:$0xf0] }
  0x27   :  { %v1348_v28 = vld [vmem:[#allocation5 + $0xa8] sm:$0xf]  ;;  %345 = vmatpush.bf16.msra.mxu0 %v1357_v16  ;;  %v1341_v29 = vor.u32 %v1792_v24, %v1340_v23  ;;  %v1793_v30 = vld [vmem:[#allocation5 + $0xb4] sm:$0xf0]  ;;  %v1791_v31 = vld [vmem:[#allocation5 + $0xac] sm:$0xf]  ;;  %v1345_v33 = vor.u32 %v1790_v26, %v1342_v27 }
  0x28   :  { %v1350_v32 = vld [vmem:[#allocation5 + $0xb8] sm:$0xf0]  ;;  %358 = vmatpush.bf16.msra.mxu1 %v1361_v17  ;;  %v1349_v34 = vor.u32 %v1793_v30, %v1348_v28  ;;  %v1324_v35 = vld [vmem:[#allocation5 + $0x80] sm:$0xf]  ;;  %v1788_v36 = vld [vmem:[#allocation5 + $0x8c] sm:$0xf0] }
  0x29   :  { %371 = vmatpush.bf16.msra.mxu2 %v1365_v21  ;;  %v1786_v37 = vld [vmem:[#allocation5 + $0x84] sm:$0xf]  ;;  %384 = vmatpush.bf16.msra.mxu3 %v1369_v25  ;;  %v1353_v38 = vor.u32 %v1791_v31, %v1350_v32  ;;  %v1326_v39 = vld [vmem:[#allocation5 + $0x90] sm:$0xf0]  ;;  %v1332_v40 = vld [vmem:[#allocation5 + $0x88] sm:$0xf]  ;;  %v1325_v44 = vor.u32 %v1788_v36, %v1324_v35 }
  0x2a   :  { %v1789_v41 = vld [vmem:[#allocation5 + $0x94] sm:$0xf0]  ;;  %v1787_v42 = vld [vmem:[#allocation5 + $0x8c] sm:$0xf]  ;;  %v1334_v43 = vld [vmem:[#allocation5 + $0x98] sm:$0xf0]  ;;  %v1329_v45 = vor.u32 %v1786_v37, %v1326_v39 }
  0x2b   :  { %346 = vmatpush.bf16.msra.mxu0 %v1341_v29  ;;  %v1333_v46 = vor.u32 %v1789_v41, %v1332_v40  ;;  %v1308_v47 = vld [vmem:[#allocation5 + $0x60] sm:$0xf]  ;;  %v1784_v48 = vld [vmem:[#allocation5 + $0x6c] sm:$0xf0]  ;;  %v1782_v49 = vld [vmem:[#allocation5 + $0x64] sm:$0xf]  ;;  %v1337_v50 = vor.u32 %v1787_v42, %v1334_v43 }
  0x2c   :  { %359 = vmatpush.bf16.msra.mxu1 %v1345_v33  ;;  %v1310_v51 = vld [vmem:[#allocation5 + $0x70] sm:$0xf0]  ;;  %v1316_v52 = vld [vmem:[#allocation5 + $0x68] sm:$0xf]  ;;  %v1785_v53 = vld [vmem:[#allocation5 + $0x74] sm:$0xf0]  ;;  %v1309_v56 = vor.u32 %v1784_v48, %v1308_v47 }
  0x2d   :  { %372 = vmatpush.bf16.msra.mxu2 %v1349_v34  ;;  %385 = vmatpush.bf16.msra.mxu3 %v1353_v38  ;;  %v1783_v54 = vld [vmem:[#allocation5 + $0x6c] sm:$0xf]  ;;  %v1318_v55 = vld [vmem:[#allocation5 + $0x78] sm:$0xf0]  ;;  %v1313_v57 = vor.u32 %v1782_v49, %v1310_v51  ;;  %v1317_v58 = vor.u32 %v1785_v53, %v1316_v52  ;;  %v1292_v59 = vld [vmem:[#allocation5 + $0x40] sm:$0xf] }
  0x2e   :  { %v1780_v60 = vld [vmem:[#allocation5 + $0x4c] sm:$0xf0]  ;;  %v1778_v61 = vld [vmem:[#allocation5 + $0x44] sm:$0xf]  ;;  %v1321_v62 = vor.u32 %v1783_v54, %v1318_v55  ;;  %v1294_v63 = vld [vmem:[#allocation5 + $0x50] sm:$0xf0] }
  0x2f   :  { %347 = vmatpush.bf16.msra.mxu0 %v1325_v44  ;;  %v1300_v0 = vld [vmem:[#allocation5 + $0x48] sm:$0xf]  ;;  %v1781_v1 = vld [vmem:[#allocation5 + $0x54] sm:$0xf0]  ;;  %v1779_v2 = vld [vmem:[#allocation5 + $0x4c] sm:$0xf]  ;;  %v1293_v4 = vor.u32 %v1780_v60, %v1292_v59  ;;  %v1297_v5 = vor.u32 %v1778_v61, %v1294_v63 }
  0x30   :  { %360 = vmatpush.bf16.msra.mxu1 %v1329_v45  ;;  %v1302_v3 = vld [vmem:[#allocation5 + $0x58] sm:$0xf0]  ;;  %v1301_v6 = vor.u32 %v1781_v1, %v1300_v0  ;;  %v1276_v7 = vld [vmem:[#allocation5 + $0x20] sm:$0xf]  ;;  %v1776_v8 = vld [vmem:[#allocation5 + $0x2c] sm:$0xf0] }
  0x31   :  { %373 = vmatpush.bf16.msra.mxu2 %v1333_v46  ;;  %386 = vmatpush.bf16.msra.mxu3 %v1337_v50  ;;  %v1774_v9 = vld [vmem:[#allocation5 + $0x24] sm:$0xf]  ;;  %v1305_v10 = vor.u32 %v1779_v2, %v1302_v3  ;;  %v1278_v11 = vld [vmem:[#allocation5 + $0x30] sm:$0xf0]  ;;  %v1284_v12 = vld [vmem:[#allocation5 + $0x28] sm:$0xf]  ;;  %v1277_v16 = vor.u32 %v1776_v8, %v1276_v7 }
  0x32   :  { %v1777_v13 = vld [vmem:[#allocation5 + $0x34] sm:$0xf0]  ;;  %v1775_v14 = vld [vmem:[#allocation5 + $0x2c] sm:$0xf]  ;;  %v1286_v15 = vld [vmem:[#allocation5 + $0x38] sm:$0xf0]  ;;  %v1281_v18 = vor.u32 %v1774_v9, %v1278_v11 }
  0x33   :  { %348 = vmatpush.bf16.msra.mxu0 %v1309_v56  ;;  %v1260_v17 = vld [vmem:[#allocation5] sm:$0xf]  ;;  %v1285_v19 = vor.u32 %v1777_v13, %v1284_v12  ;;  %v1772_v20 = vld [vmem:[#allocation5 + $0xc] sm:$0xf0]  ;;  %v1770_v21 = vld [vmem:[#allocation5 + $0x4] sm:$0xf]  ;;  %v1289_v23 = vor.u32 %v1775_v14, %v1286_v15 }
  0x34   :  { %361 = vmatpush.bf16.msra.mxu1 %v1313_v57  ;;  %v1262_v22 = vld [vmem:[#allocation5 + $0x10] sm:$0xf0]  ;;  %v1268_v24 = vld [vmem:[#allocation5 + $0x8] sm:$0xf]  ;;  %v1773_v25 = vld [vmem:[#allocation5 + $0x14] sm:$0xf0]  ;;  %v1261_v30 = vor.u32 %v1772_v20, %v1260_v17 }
  0x35   :  { %374 = vmatpush.bf16.msra.mxu2 %v1317_v58  ;;  %387 = vmatpush.bf16.msra.mxu3 %v1321_v62  ;;  %v1771_v26 = vld [vmem:[#allocation5 + $0xc] sm:$0xf]  ;;  %v1270_v27 = vld [vmem:[#allocation5 + $0x18] sm:$0xf0]  ;;  %v1444_v28 = vld [vmem:[#allocation8 + $0x70] sm:$0xf]  ;;  %v1265_v33 = vor.u32 %v1770_v21, %v1262_v22  ;;  %v1269_v34 = vor.u32 %v1773_v25, %v1268_v24 }
  0x36   :  { %v1817_v29 = vld [vmem:[#allocation8 + $0x74] sm:$0xf0]  ;;  %v1508_v31 = vld [vmem:[#allocation8 + $0xf0] sm:$0xf]  ;;  %v1273_v35 = vor.u32 %v1771_v26, %v1270_v27  ;;  %v1816_v37 = vld [vmem:[#allocation8 + $0x74] sm:$0xf] }
  0x37   :  { %349 = vmatpush.bf16.msra.mxu0 %v1293_v4  ;;  %v1833_v32 = vld [vmem:[#allocation8 + $0xf4] sm:$0xf0]  ;;  %v1445_v36 = vor.u32 %v1817_v29, %v1444_v28  ;;  %v1446_v38 = vld [vmem:[#allocation8 + $0x78] sm:$0xf0]  ;;  %v1832_v39 = vld [vmem:[#allocation8 + $0xf4] sm:$0xf] }
  0x38   :  { %362 = vmatpush.bf16.msra.mxu1 %v1297_v5  ;;  %v1509_v40 = vor.u32 %v1833_v32, %v1508_v31  ;;  %v1510_v41 = vld [vmem:[#allocation8 + $0xf8] sm:$0xf0]  ;;  %v1436_v42 = vld [vmem:[#allocation8 + $0x60] sm:$0xf]  ;;  %v1815_v43 = vld [vmem:[#allocation8 + $0x64] sm:$0xf0]  ;;  %v1449_v47 = vor.u32 %v1816_v37, %v1446_v38 }
  0x39   :  { %375 = vmatpush.bf16.msra.mxu2 %v1301_v6  ;;  %388 = vmatpush.bf16.msra.mxu3 %v1305_v10  ;;  %v141_v44 = vld [vmem:[#allocation2] sm:$0xf]  ;;  %v1500_v45 = vld [vmem:[#allocation8 + $0xe0] sm:$0xf]  ;;  %v1831_v46 = vld [vmem:[#allocation8 + $0xe4] sm:$0xf0]  ;;  %v1513_v48 = vor.u32 %v1832_v39, %v1510_v41  ;;  %v1437_v49 = vor.u32 %v1815_v43, %v1436_v42 }
  0x3a   :  { %v1814_v50 = vld [vmem:[#allocation8 + $0x64] sm:$0xf]  ;;  %v1438_v51 = vld [vmem:[#allocation8 + $0x68] sm:$0xf0]  ;;  %v1501_v53 = vor.u32 %v1831_v46, %v1500_v45  ;;  %v1428_v55 = vld [vmem:[#allocation8 + $0x50] sm:$0xf] }
  0x3b   :  { %350 = vmatpush.bf16.msra.mxu0 %v1277_v16  ;;  %v1830_v52 = vld [vmem:[#allocation8 + $0xe4] sm:$0xf]  ;;  %v1502_v54 = vld [vmem:[#allocation8 + $0xe8] sm:$0xf0]  ;;  %v1813_v56 = vld [vmem:[#allocation8 + $0x54] sm:$0xf0]  ;;  %v1441_v59 = vor.u32 %v1814_v50, %v1438_v51 }
  0x3c   :  { %363 = vmatpush.bf16.msra.mxu1 %v1281_v18  ;;  %v1492_v57 = vld [vmem:[#allocation8 + $0xd0] sm:$0xf]  ;;  %v1829_v58 = vld [vmem:[#allocation8 + $0xd4] sm:$0xf0]  ;;  %v1505_v60 = vor.u32 %v1830_v52, %v1502_v54  ;;  %v1429_v61 = vor.u32 %v1813_v56, %v1428_v55  ;;  %v1812_v62 = vld [vmem:[#allocation8 + $0x54] sm:$0xf] }
  0x3d   :  { %376 = vmatpush.bf16.msra.mxu2 %v1285_v19  ;;  %389 = vmatpush.bf16.msra.mxu3 %v1289_v23  ;;  %v1430_v63 = vld [vmem:[#allocation8 + $0x58] sm:$0xf0]  ;;  %v1828_v0 = vld [vmem:[#allocation8 + $0xd4] sm:$0xf]  ;;  %v1493_v1 = vor.u32 %v1829_v58, %v1492_v57  ;;  %v1420_v3 = vld [vmem:[#allocation8 + $0x40] sm:$0xf] }
  0x3e   :  { %v1494_v2 = vld [vmem:[#allocation8 + $0xd8] sm:$0xf0]  ;;  %v1811_v4 = vld [vmem:[#allocation8 + $0x44] sm:$0xf0]  ;;  %v1484_v5 = vld [vmem:[#allocation8 + $0xc0] sm:$0xf]  ;;  %v1433_v7 = vor.u32 %v1812_v62, %v1430_v63 }
  0x3f   :  { %351 = vmatpush.bf16.msra.mxu0 %v1261_v30  ;;  %v1827_v6 = vld [vmem:[#allocation8 + $0xc4] sm:$0xf0]  ;;  %v1497_v8 = vor.u32 %v1828_v0, %v1494_v2  ;;  %v1421_v9 = vor.u32 %v1811_v4, %v1420_v3  ;;  %v1810_v10 = vld [vmem:[#allocation8 + $0x44] sm:$0xf]  ;;  %v1422_v11 = vld [vmem:[#allocation8 + $0x48] sm:$0xf0] }
  0x40   :  { %364 = vmatpush.bf16.msra.mxu1 %v1265_v33  ;;  %v1826_v12 = vld [vmem:[#allocation8 + $0xc4] sm:$0xf]  ;;  %v1485_v13 = vor.u32 %v1827_v6, %v1484_v5  ;;  %v1486_v14 = vld [vmem:[#allocation8 + $0xc8] sm:$0xf0]  ;;  %v1412_v15 = vld [vmem:[#allocation8 + $0x30] sm:$0xf]  ;;  %v1425_v19 = vor.u32 %v1810_v10, %v1422_v11 }
  0x41   :  { %377 = vmatpush.bf16.msra.mxu2 %v1269_v34  ;;  %390 = vmatpush.bf16.msra.mxu3 %v1273_v35  ;;  %v1809_v16 = vld [vmem:[#allocation8 + $0x34] sm:$0xf0]  ;;  %v1476_v17 = vld [vmem:[#allocation8 + $0xb0] sm:$0xf]  ;;  %v1808_v20 = vld [vmem:[#allocation8 + $0x34] sm:$0xf]  ;;  %v1489_v21 = vor.u32 %v1826_v12, %v1486_v14 }
  0x42   :  { %352 = vmatmul.bf16.vlgmr.msra.gmra.mxu0 %v141_v44  ;;  %v1825_v18 = vld [vmem:[#allocation8 + $0xb4] sm:$0xf0]  ;;  %v1413_v22 = vor.u32 %v1809_v16, %v1412_v15  ;;  %v1414_v23 = vld [vmem:[#allocation8 + $0x38] sm:$0xf0]  ;;  %v1824_v24 = vld [vmem:[#allocation8 + $0xb4] sm:$0xf] }
  0x43   :  { %607 = vmatpush.bf16.msrb.mxu0 %v1445_v36  ;;  %365 = vmatmul.bf16.vlgmr.msra.gmra.mxu1 %v141_v44  ;;  %v1478_v25 = vld [vmem:[#allocation8 + $0xb8] sm:$0xf0]  ;;  %v1477_v26 = vor.u32 %v1825_v18, %v1476_v17  ;;  %v1404_v27 = vld [vmem:[#allocation8 + $0x20] sm:$0xf]  ;;  %v1807_v28 = vld [vmem:[#allocation8 + $0x24] sm:$0xf0]  ;;  %v1417_v31 = vor.u32 %v1808_v20, %v1414_v23 }
  0x44   :  { %620 = vmatpush.bf16.msrb.mxu1 %v1509_v40  ;;  %378 = vmatmul.bf16.vlgmr.msra.gmra.mxu2 %v141_v44  ;;  %v1468_v29 = vld [vmem:[#allocation8 + $0xa0] sm:$0xf]  ;;  %v1823_v30 = vld [vmem:[#allocation8 + $0xa4] sm:$0xf0]  ;;  %v1481_v32 = vor.u32 %v1824_v24, %v1478_v25  ;;  %v1405_v33 = vor.u32 %v1807_v28, %v1404_v27  ;;  %v1806_v34 = vld [vmem:[#allocation8 + $0x24] sm:$0xf] }
  0x45   :  { %391 = vmatmul.bf16.vlgmr.msra.gmra.mxu3 %v141_v44  ;;  %633 = vmatpush.bf16.msrb.mxu2 %v1449_v47  ;;  %v1406_v35 = vld [vmem:[#allocation8 + $0x28] sm:$0xf0]  ;;  %v1822_v36 = vld [vmem:[#allocation8 + $0xa4] sm:$0xf]  ;;  %v1469_v37 = vor.u32 %v1823_v30, %v1468_v29  ;;  %v1396_v39 = vld [vmem:[#allocation8 + $0x10] sm:$0xf] }
  0x46   :  { %646 = vmatpush.bf16.msrb.mxu3 %v1513_v48  ;;  %v1470_v38 = vld [vmem:[#allocation8 + $0xa8] sm:$0xf0]  ;;  %v1805_v40 = vld [vmem:[#allocation8 + $0x14] sm:$0xf0]  ;;  %v1460_v41 = vld [vmem:[#allocation8 + $0x90] sm:$0xf]  ;;  %v1409_v43 = vor.u32 %v1806_v34, %v1406_v35 }
  0x47   :  { %608 = vmatpush.bf16.msrb.mxu0 %v1437_v49  ;;  %v1821_v42 = vld [vmem:[#allocation8 + $0x94] sm:$0xf0]  ;;  %v1804_v44 = vld [vmem:[#allocation8 + $0x14] sm:$0xf]  ;;  %v1473_v45 = vor.u32 %v1822_v36, %v1470_v38  ;;  %v1397_v46 = vor.u32 %v1805_v40, %v1396_v39  ;;  %v1398_v47 = vld [vmem:[#allocation8 + $0x18] sm:$0xf0] }
  0x48   :  { %621 = vmatpush.bf16.msrb.mxu1 %v1501_v53  ;;  %v1820_v48 = vld [vmem:[#allocation8 + $0x94] sm:$0xf]  ;;  %v1462_v49 = vld [vmem:[#allocation8 + $0x98] sm:$0xf0]  ;;  %v1461_v50 = vor.u32 %v1821_v42, %v1460_v41  ;;  %v1388_v51 = vld [vmem:[#allocation8] sm:$0xf]  ;;  %v1401_v57 = vor.u32 %v1804_v44, %v1398_v47 }
  0x49   :  { %634 = vmatpush.bf16.msrb.mxu2 %v1441_v59  ;;  %v1803_v52 = vld [vmem:[#allocation8 + $0x4] sm:$0xf0]  ;;  %v1452_v53 = vld [vmem:[#allocation8 + $0x80] sm:$0xf]  ;;  %v1572_v55 = vld [vmem:[#allocation10 + $0x70] sm:$0xf] }
  0x4a   :  { %647 = vmatpush.bf16.msrb.mxu3 %v1505_v60  ;;  %v1819_v54 = vld [vmem:[#allocation8 + $0x84] sm:$0xf0]  ;;  %v1849_v56 = vld [vmem:[#allocation10 + $0x74] sm:$0xf0]  ;;  %v1636_v58 = vld [vmem:[#allocation10 + $0xf0] sm:$0xf]  ;;  %v1465_v60 = vor.u32 %v1820_v48, %v1462_v49 }
  0x4b   :  { %609 = vmatpush.bf16.msrb.mxu0 %v1429_v61  ;;  %v1865_v59 = vld [vmem:[#allocation10 + $0xf4] sm:$0xf0]  ;;  %v1389_v61 = vor.u32 %v1803_v52, %v1388_v51  ;;  %v1802_v62 = vld [vmem:[#allocation8 + $0x4] sm:$0xf]  ;;  %v1390_v63 = vld [vmem:[#allocation8 + $0x8] sm:$0xf0]  ;;  %v1573_v3 = vor.u32 %v1849_v56, %v1572_v55 }
  0x4c   :  { %622 = vmatpush.bf16.msrb.mxu1 %v1493_v1  ;;  %v1818_v0 = vld [vmem:[#allocation8 + $0x84] sm:$0xf]  ;;  %v1453_v1 = vor.u32 %v1819_v54, %v1452_v53  ;;  %v1454_v2 = vld [vmem:[#allocation8 + $0x88] sm:$0xf0]  ;;  %v1848_v4 = vld [vmem:[#allocation10 + $0x74] sm:$0xf]  ;;  %v1637_v6 = vor.u32 %v1865_v59, %v1636_v58 }
  0x4d   :  { %635 = vmatpush.bf16.msrb.mxu2 %v1433_v7  ;;  %v1574_v5 = vld [vmem:[#allocation10 + $0x78] sm:$0xf0]  ;;  %v1864_v7 = vld [vmem:[#allocation10 + $0xf4] sm:$0xf]  ;;  %v1457_v10 = vor.u32 %v1818_v0, %v1454_v2  ;;  %v1847_v14 = vld [vmem:[#allocation10 + $0x64] sm:$0xf0] }
  0x4e   :  { %648 = vmatpush.bf16.msrb.mxu3 %v1497_v8  ;;  %v1638_v8 = vld [vmem:[#allocation10 + $0xf8] sm:$0xf0]  ;;  %v1577_v11 = vor.u32 %v1848_v4, %v1574_v5  ;;  %v1628_v15 = vld [vmem:[#allocation10 + $0xe0] sm:$0xf]  ;;  %v1863_v17 = vld [vmem:[#allocation10 + $0xe4] sm:$0xf0] }
  0x4f   :  { %610 = vmatpush.bf16.msrb.mxu0 %v1421_v9  ;;  %v1393_v9 = vor.u32 %v1802_v62, %v1390_v63  ;;  %v1641_v12 = vor.u32 %v1864_v7, %v1638_v8  ;;  %v1846_v18 = vld [vmem:[#allocation10 + $0x64] sm:$0xf]  ;;  %v1629_v20 = vor.u32 %v1863_v17, %v1628_v15  ;;  %v1630_v23 = vld [vmem:[#allocation10 + $0xe8] sm:$0xf0]  ;;  %v1556_v25 = vld [vmem:[#allocation10 + $0x50] sm:$0xf] }
  0x50   :  { %623 = vmatpush.bf16.msrb.mxu1 %v1485_v13  ;;  %v1564_v13 = vld [vmem:[#allocation10 + $0x60] sm:$0xf]  ;;  %v1620_v27 = vld [vmem:[#allocation10 + $0xd0] sm:$0xf]  ;;  %v1861_v29 = vld [vmem:[#allocation10 + $0xd4] sm:$0xf0] }
  0x51   :  { %636 = vmatpush.bf16.msrb.mxu2 %v1425_v19  ;;  %v1565_v16 = vor.u32 %v1847_v14, %v1564_v13  ;;  %v1566_v19 = vld [vmem:[#allocation10 + $0x68] sm:$0xf0]  ;;  %v1844_v30 = vld [vmem:[#allocation10 + $0x54] sm:$0xf]  ;;  %v1622_v35 = vld [vmem:[#allocation10 + $0xd8] sm:$0xf0] }
  0x52   :  { %649 = vmatpush.bf16.msrb.mxu3 %v1489_v21  ;;  %v1569_v21 = vor.u32 %v1846_v18, %v1566_v19  ;;  %v1860_v34 = vld [vmem:[#allocation10 + $0xd4] sm:$0xf]  ;;  %v1843_v38 = vld [vmem:[#allocation10 + $0x44] sm:$0xf0]  ;;  %v1612_v39 = vld [vmem:[#allocation10 + $0xc0] sm:$0xf] }
  0x53   :  { %611 = vmatpush.bf16.msrb.mxu0 %v1413_v22  ;;  %v1862_v22 = vld [vmem:[#allocation10 + $0xe4] sm:$0xf]  ;;  %v1625_v36 = vor.u32 %v1860_v34, %v1622_v35  ;;  %v1859_v41 = vld [vmem:[#allocation10 + $0xc4] sm:$0xf0]  ;;  %v1614_v47 = vld [vmem:[#allocation10 + $0xc8] sm:$0xf0] }
  0x54   :  { %624 = vmatpush.bf16.msrb.mxu1 %v1477_v26  ;;  %v1633_v24 = vor.u32 %v1862_v22, %v1630_v23  ;;  %v1845_v26 = vld [vmem:[#allocation10 + $0x54] sm:$0xf0]  ;;  %v1842_v42 = vld [vmem:[#allocation10 + $0x44] sm:$0xf]  ;;  %v1613_v44 = vor.u32 %v1859_v41, %v1612_v39  ;;  %v1540_v49 = vld [vmem:[#allocation10 + $0x30] sm:$0xf] }
  0x55   :  { %637 = vmatpush.bf16.msrb.mxu2 %v1417_v31  ;;  %v1557_v28 = vor.u32 %v1845_v26, %v1556_v25  ;;  %v1558_v31 = vld [vmem:[#allocation10 + $0x58] sm:$0xf0]  ;;  %v1604_v51 = vld [vmem:[#allocation10 + $0xb0] sm:$0xf]  ;;  %v1857_v53 = vld [vmem:[#allocation10 + $0xb4] sm:$0xf0] }
  0x56   :  { %650 = vmatpush.bf16.msrb.mxu3 %v1481_v32  ;;  %v1621_v32 = vor.u32 %v1861_v29, %v1620_v27  ;;  %v1840_v54 = vld [vmem:[#allocation10 + $0x34] sm:$0xf]  ;;  %v1542_v55 = vld [vmem:[#allocation10 + $0x38] sm:$0xf0]  ;;  %v1605_v56 = vor.u32 %v1857_v53, %v1604_v51  ;;  %v1839_v62 = vld [vmem:[#allocation10 + $0x24] sm:$0xf0] }
  0x57   :  { %612 = vmatpush.bf16.msrb.mxu0 %v1405_v33  ;;  %v1561_v33 = vor.u32 %v1844_v30, %v1558_v31  ;;  %v1856_v58 = vld [vmem:[#allocation10 + $0xb4] sm:$0xf]  ;;  %v1606_v59 = vld [vmem:[#allocation10 + $0xb8] sm:$0xf0]  ;;  %v1596_v63 = vld [vmem:[#allocation10 + $0xa0] sm:$0xf] }
  0x58   :  { %625 = vmatpush.bf16.msrb.mxu1 %v1469_v37  ;;  %v1548_v37 = vld [vmem:[#allocation10 + $0x40] sm:$0xf]  ;;  %v1838_v2 = vld [vmem:[#allocation10 + $0x24] sm:$0xf]  ;;  %v1598_v7 = vld [vmem:[#allocation10 + $0xa8] sm:$0xf0] }
  0x59   :  { %638 = vmatpush.bf16.msrb.mxu2 %v1409_v43  ;;  %v1549_v40 = vor.u32 %v1843_v38, %v1548_v37  ;;  %v1550_v43 = vld [vmem:[#allocation10 + $0x48] sm:$0xf0]  ;;  %v1524_v8 = vld [vmem:[#allocation10 + $0x10] sm:$0xf]  ;;  %v1836_v15 = vld [vmem:[#allocation10 + $0x14] sm:$0xf] }
  0x5a   :  { %651 = vmatpush.bf16.msrb.mxu3 %v1473_v45  ;;  %v1553_v45 = vor.u32 %v1842_v42, %v1550_v43  ;;  %v1852_v17 = vld [vmem:[#allocation10 + $0x94] sm:$0xf]  ;;  %v1590_v19 = vld [vmem:[#allocation10 + $0x98] sm:$0xf0]  ;;  %v1580_v23 = vld [vmem:[#allocation10 + $0x80] sm:$0xf] }
  0x5b   :  { %613 = vmatpush.bf16.msrb.mxu0 %v1397_v46  ;;  %v1858_v46 = vld [vmem:[#allocation10 + $0xc4] sm:$0xf]  ;;  %v1593_v22 = vor.u32 %v1852_v17, %v1590_v19  ;;  %v1518_v27 = vld [vmem:[#allocation10 + $0x8] sm:$0xf0]  ;;  %v1876_v17 = vld [vmem:[#allocation11 + $0x50] sm:$0xff]  ;;  %s2128_s3 = smov [#allocation14]  }
  0x5c   :  { %626 = vmatpush.bf16.msrb.mxu1 %v1461_v50  ;;  %v1617_v48 = vor.u32 %v1858_v46, %v1614_v47  ;;  %v1841_v50 = vld [vmem:[#allocation10 + $0x34] sm:$0xf0]  ;;  %v1834_v25 = vld [vmem:[#allocation10 + $0x4] sm:$0xf]  ;;  %v1582_v29 = vld [vmem:[#allocation10 + $0x88] sm:$0xf0] }
  0x5d   :  { %639 = vmatpush.bf16.msrb.mxu2 %v1401_v57  ;;  %v1541_v52 = vor.u32 %v1841_v50, %v1540_v49  ;;  %v1545_v57 = vor.u32 %v1840_v54, %v1542_v55  ;;  %v1521_v31 = vor.u32 %v1834_v25, %v1518_v27  ;;  %v1873_v55 = vld [vmem:[#allocation11 + $0x38] sm:$0xff]  ;;  %v1866_v19 = vld [vmem:[#allocation11] sm:$0xff]  ;;  %v1884_v25 = vld [vmem:[#allocation13 + $0x10] sm:$0xff]  ;;  %s1243_s30 = sshll.u32 %s2128_s3, 4  ;;  %s1245_s13 = sshll.u32 %s2233_s10, 4  ;;  %s1244_s30 = int_to_ptr.vmem [resolvable:$true] %s1243_s30  ;;  %s1246_s13 = int_to_ptr.hbm [resolvable:$true] %s1245_s13 }
  0x5e   :  { %652 = vmatpush.bf16.msrb.mxu3 %v1465_v60  ;;  %v1609_v60 = vor.u32 %v1856_v58, %v1606_v59  ;;  %v1883_v27 = vld [vmem:[#allocation13 + $0x8] sm:$0xff] }
  0x5f   :  { %614 = vmatpush.bf16.msrb.mxu0 %v1389_v61  ;;  %v1532_v61 = vld [vmem:[#allocation10 + $0x20] sm:$0xf] }
  0x60   :  { %627 = vmatpush.bf16.msrb.mxu1 %v1453_v1  ;;  %v1533_v0 = vor.u32 %v1839_v62, %v1532_v61  ;;  %v1855_v1 = vld [vmem:[#allocation10 + $0xa4] sm:$0xf0]  ;;  %v1880_v61 = vld [vmem:[#allocation11 + $0x70] sm:$0xff] }
  0x61   :  { %640 = vmatpush.bf16.msrb.mxu2 %v1393_v9  ;;  %v1597_v4 = vor.u32 %v1855_v1, %v1596_v63  ;;  %v1888_v63 = vld [vmem:[#allocation13 + $0x30] sm:$0xff] }
  0x62   :  { %653 = vmatpush.bf16.msrb.mxu3 %v1457_v10  ;;  %v1837_v10 = vld [vmem:[#allocation10 + $0x14] sm:$0xf0] }
  0x63   :  { %868 = vmatpush.bf16.msra.mxu0 %v1573_v3  ;;  %v1534_v3 = vld [vmem:[#allocation10 + $0x28] sm:$0xf0]  ;;  %v1525_v13 = vor.u32 %v1837_v10, %v1524_v8  ;;  %v1869_v10 = vld [vmem:[#allocation11 + $0x18] sm:$0xff] }
  0x64   :  { %881 = vmatpush.bf16.msra.mxu1 %v1637_v6  ;;  %v1537_v5 = vor.u32 %v1838_v2, %v1534_v3  ;;  %v1854_v6 = vld [vmem:[#allocation10 + $0xa4] sm:$0xf]  ;;  %v1871_v2 = vld [vmem:[#allocation11 + $0x28] sm:$0xff] }
  0x65   :  { %894 = vmatpush.bf16.msra.mxu2 %v1577_v11  ;;  %v1601_v9 = vor.u32 %v1854_v6, %v1598_v7  ;;  %v1588_v11 = vld [vmem:[#allocation10 + $0x90] sm:$0xf]  ;;  %v1879_v3 = vld [vmem:[#allocation11 + $0x68] sm:$0xff]  ;;  %v1870_v6 = vld [vmem:[#allocation11 + $0x20] sm:$0xff] }
  0x66   :  { %907 = vmatpush.bf16.msra.mxu3 %v1641_v12  ;;  %v1853_v12 = vld [vmem:[#allocation10 + $0x94] sm:$0xf0]  ;;  %v1878_v7 = vld [vmem:[#allocation11 + $0x60] sm:$0xff] }
  0x67   :  { %869 = vmatpush.bf16.msra.mxu0 %v1565_v16  ;;  %v1589_v14 = vor.u32 %v1853_v12, %v1588_v11  ;;  %v1526_v16 = vld [vmem:[#allocation10 + $0x18] sm:$0xf0]  ;;  %v1868_v11 = vld [vmem:[#allocation11 + $0x10] sm:$0xff] }
  0x68   :  { %882 = vmatpush.bf16.msra.mxu1 %v1629_v20  ;;  %v1529_v18 = vor.u32 %v1836_v15, %v1526_v16  ;;  %v1516_v20 = vld [vmem:[#allocation10] sm:$0xf]  ;;  %v1897_v12 = vld [vmem:[#allocation13 + $0x78] sm:$0xff]  ;;  %v1867_v15 = vld [vmem:[#allocation11 + $0x8] sm:$0xff] }
  0x69   :  { %895 = vmatpush.bf16.msra.mxu2 %v1569_v21  ;;  %v1835_v21 = vld [vmem:[#allocation10 + $0x4] sm:$0xf0]  ;;  %v1896_v16 = vld [vmem:[#allocation13 + $0x70] sm:$0xff] }
  0x6a   :  { %908 = vmatpush.bf16.msra.mxu3 %v1633_v24  ;;  %v1851_v24 = vld [vmem:[#allocation10 + $0x84] sm:$0xf0]  ;;  %v1517_v26 = vor.u32 %v1835_v21, %v1516_v20 }
  0x6b   :  { %870 = vmatpush.bf16.msra.mxu0 %v1557_v28  ;;  %v1850_v28 = vld [vmem:[#allocation10 + $0x84] sm:$0xf]  ;;  %v1581_v30 = vor.u32 %v1851_v24, %v1580_v23  ;;  %v1895_v20 = vld [vmem:[#allocation13 + $0x68] sm:$0xff] }
  0x6c   :  { %883 = vmatpush.bf16.msra.mxu1 %v1621_v32  ;;  %v1585_v32 = vor.u32 %v1850_v28, %v1582_v29  ;;  %v1875_v21 = vld [vmem:[#allocation11 + $0x48] sm:$0xff]  ;;  %v1894_v23 = vld [vmem:[#allocation13 + $0x60] sm:$0xff]  ;;  %v1892_v28 = vld [vmem:[#allocation13 + $0x50] sm:$0xff] }
  0x6d   :  { %896 = vmatpush.bf16.msra.mxu2 %v1561_v33  ;;  %v174_v33 = vld [vmem:[#allocation7] sm:$0xf]  ;;  %v1874_v24 = vld [vmem:[#allocation11 + $0x40] sm:$0xff] }
  0x6e   :  { %909 = vmatpush.bf16.msra.mxu3 %v1625_v36  ;;  %v176_v34 = vperm.slane %v174_v33, 0  ;;  %v177_v35 = vperm.slane %v174_v33, 1  ;;  %v178_v42 = vperm.slane %v174_v33, 2  ;;  %v179_v43 = vperm.slane %v174_v33, 3  ;;  %v1882_v29 = vld [vmem:[#allocation13] sm:$0xff] }
  0x6f   :  { %871 = vmatpush.bf16.msra.mxu0 %v1549_v40 }
  0x70   :  { %884 = vmatpush.bf16.msra.mxu1 %v1613_v44 }
  0x71   :  { %897 = vmatpush.bf16.msra.mxu2 %v1553_v45 }
  0x72   :  { %910 = vmatpush.bf16.msra.mxu3 %v1617_v48 }
  0x73   :  { %872 = vmatpush.bf16.msra.mxu0 %v1541_v52 }
  0x74   :  { %885 = vmatpush.bf16.msra.mxu1 %v1605_v56  ;;  %v1881_v56 = vld [vmem:[#allocation11 + $0x78] sm:$0xff] }
  0x75   :  { %898 = vmatpush.bf16.msra.mxu2 %v1545_v57  ;;  %v1889_v57 = vld [vmem:[#allocation13 + $0x38] sm:$0xff] }
  0x76   :  { %911 = vmatpush.bf16.msra.mxu3 %v1609_v60  ;;  %v1872_v60 = vld [vmem:[#allocation11 + $0x30] sm:$0xff] }
  0x77   :  { %873 = vmatpush.bf16.msra.mxu0 %v1533_v0 }
  0x78   :  { %886 = vmatpush.bf16.msra.mxu1 %v1597_v4 }
  0x79   :  { %899 = vmatpush.bf16.msra.mxu2 %v1537_v5 }
  0x7a   :  { %912 = vmatpush.bf16.msra.mxu3 %v1601_v9 }
  0x7b   :  { %874 = vmatpush.bf16.msra.mxu0 %v1525_v13  ;;  %v1877_v13 = vld [vmem:[#allocation11 + $0x58] sm:$0xff] }
  0x7c   :  { %887 = vmatpush.bf16.msra.mxu1 %v1589_v14  ;;  %v1887_v14 = vld [vmem:[#allocation13 + $0x28] sm:$0xff] }
  0x7d   :  { %900 = vmatpush.bf16.msra.mxu2 %v1529_v18  ;;  %v1886_v18 = vld [vmem:[#allocation13 + $0x20] sm:$0xff] }
  0x7e   :  { %913 = vmatpush.bf16.msra.mxu3 %v1593_v22  ;;  %v1885_v22 = vld [vmem:[#allocation13 + $0x18] sm:$0xff] }
  0x7f   :  { %875 = vmatpush.bf16.msra.mxu0 %v1517_v26  ;;  %v1893_v26 = vld [vmem:[#allocation13 + $0x58] sm:$0xff] }
  0x80   :  { %888 = vmatpush.bf16.msra.mxu1 %v1581_v30  ;;  %v1891_v30 = vld [vmem:[#allocation13 + $0x48] sm:$0xff] }
  0x81   :  { %901 = vmatpush.bf16.msra.mxu2 %v1521_v31  ;;  %v434_v31 = vld [vmem:[%s2227_s4] sm:$0x3] }
  0x82   :  { %914 = vmatpush.bf16.msra.mxu3 %v1585_v32  ;;  %v1890_v32 = vld [vmem:[#allocation13 + $0x40] sm:$0xff]  ;;  %v436_v33 = vperm.slane %v434_v31, 0 }
  0xbf   :  { %v353_v36 = vpop.f32.mrf.mxu0 }
  0xc0   :  { %v354_v37 = vadd.f32 %v353_v36, %v176_v34  ;;  %v366_v38 = vpop.f32.mrf.mxu1 }
  0xc1   :  { %v367_v39 = vadd.f32 %v366_v38, %v177_v35  ;;  %v437_v38 = vperm.slane %v434_v31, 1 }
  0xc2   :  { %v396_v40 = vmax.f32 %v354_v37, 0.0 }
  0xc3   :  { %v397_v41 = vmax.f32 %v367_v39, 0.0 }
  0xc5   :  { %v400_v44 = vpack.c.bf16 %v397_v41, %v396_v40 }
  0xc7   :  { %v379_v45 = vpop.f32.mrf.mxu2  ;;  %v355_v46 = vpop.f32.mrf.mxu0  ;;  %v441_v49 = vunpack.c.l.b16 %v400_v44  ;;  %v442_v50 = vunpack.c.h.b16 %v400_v44 }
  0xc8   :  { %v380_v47 = vadd.f32 %v379_v45, %v178_v42  ;;  %v392_v48 = vpop.f32.mrf.mxu3  ;;  %v368_v51 = vpop.f32.mrf.mxu1 }
  0xc9   :  { %v393_v52 = vadd.f32 %v392_v48, %v179_v43  ;;  %v443_v53 = vpack.c.b16 %v441_v49, %v441_v49  ;;  %v444_v54 = vpack.c.b16 %v442_v50, %v442_v50 }
  0xca   :  { %v398_v58 = vmax.f32 %v380_v47, 0.0  ;;  %v695_v47 = vld [vmem:[%s2229_s6] sm:$0x3] }
  0xcb   :  { %v399_v59 = vmax.f32 %v393_v52, 0.0  ;;  %615 = vmatmul.bf16.vlgmr.msrb.gmra.mxu0 %v443_v53  ;;  %628 = vmatmul.bf16.vlgmr.msrb.gmra.mxu1 %v444_v54  ;;  %v697_v49 = vperm.slane %v695_v47, 0 }
  0xcc   :  { %641 = vmatmul.bf16.vlgmr.msrb.gmra.mxu2 %v443_v53  ;;  %654 = vmatmul.bf16.vlgmr.msrb.gmra.mxu3 %v444_v54 }
  0xcd   :  { %1206 = vmatpush.bf16.msrb.mxu2 %v1873_v55  ;;  %1219 = vmatpush.bf16.msrb.mxu3 %v1881_v56  ;;  %v401_v0 = vpack.c.bf16 %v399_v59, %v398_v58 }
  0xce   :  { %1084 = vmatpush.bf16.msrb.mxu0 %v1889_v57  ;;  %1097 = vmatpush.bf16.msrb.mxu1 %v1897_v12  ;;  %v698_v57 = vperm.slane %v695_v47, 1 }
  0xcf   :  { %v381_v62 = vpop.f32.mrf.mxu2  ;;  %v702_v4 = vunpack.c.l.b16 %v401_v0  ;;  %v703_v5 = vunpack.c.h.b16 %v401_v0 }
  0xd0   :  { %v394_v1 = vpop.f32.mrf.mxu3 }
  0xd1   :  { %1207 = vmatpush.bf16.msrb.mxu2 %v1872_v60  ;;  %1220 = vmatpush.bf16.msrb.mxu3 %v1880_v61  ;;  %v704_v8 = vpack.c.b16 %v702_v4, %v702_v4  ;;  %v705_v9 = vpack.c.b16 %v703_v5, %v703_v5 }
  0xd2   :  { %1085 = vmatpush.bf16.msrb.mxu0 %v1888_v63  ;;  %1098 = vmatpush.bf16.msrb.mxu1 %v1896_v16 }
  0xd5   :  { %1208 = vmatpush.bf16.msrb.mxu2 %v1871_v2  ;;  %1221 = vmatpush.bf16.msrb.mxu3 %v1879_v3 }
  0xd6   :  { %1086 = vmatpush.bf16.msrb.mxu0 %v1887_v14  ;;  %1099 = vmatpush.bf16.msrb.mxu1 %v1895_v20 }
  0xd9   :  { %1209 = vmatpush.bf16.msrb.mxu2 %v1870_v6  ;;  %1222 = vmatpush.bf16.msrb.mxu3 %v1878_v7 }
  0xda   :  { %1087 = vmatpush.bf16.msrb.mxu0 %v1886_v18  ;;  %1100 = vmatpush.bf16.msrb.mxu1 %v1894_v23 }
  0xdb   :  { %876 = vmatmul.bf16.vlgmr.msra.gmra.mxu0 %v704_v8  ;;  %889 = vmatmul.bf16.vlgmr.msra.gmra.mxu1 %v705_v9 }
  0xdc   :  { %902 = vmatmul.bf16.vlgmr.msra.gmra.mxu2 %v704_v8  ;;  %915 = vmatmul.bf16.vlgmr.msra.gmra.mxu3 %v705_v9 }
  0xdd   :  { %1210 = vmatpush.bf16.msrb.mxu2 %v1869_v10  ;;  %1223 = vmatpush.bf16.msrb.mxu3 %v1877_v13 }
  0xde   :  { %1088 = vmatpush.bf16.msrb.mxu0 %v1885_v22  ;;  %1101 = vmatpush.bf16.msrb.mxu1 %v1893_v26 }
  0xe1   :  { %1211 = vmatpush.bf16.msrb.mxu2 %v1868_v11  ;;  %1224 = vmatpush.bf16.msrb.mxu3 %v1876_v17 }
  0xe2   :  { %1089 = vmatpush.bf16.msrb.mxu0 %v1884_v25  ;;  %1102 = vmatpush.bf16.msrb.mxu1 %v1892_v28 }
  0xe5   :  { %1212 = vmatpush.bf16.msrb.mxu2 %v1867_v15  ;;  %1225 = vmatpush.bf16.msrb.mxu3 %v1875_v21  ;;  %v1912_v15 = vld [vmem:[%s2232_s9] ss:$0 sm:$0xff] }
  0xe6   :  { %1090 = vmatpush.bf16.msrb.mxu0 %v1883_v27  ;;  %1103 = vmatpush.bf16.msrb.mxu1 %v1891_v30 }
  0xe9   :  { %1213 = vmatpush.bf16.msrb.mxu2 %v1866_v19  ;;  %1226 = vmatpush.bf16.msrb.mxu3 %v1874_v24 }
  0xea   :  { %1091 = vmatpush.bf16.msrb.mxu0 %v1882_v29  ;;  %1104 = vmatpush.bf16.msrb.mxu1 %v1890_v32 }
 0x148   :  { %v616_v34 = vpop.f32.mrf.mxu0  ;;  %v629_v35 = vpop.f32.mrf.mxu1 }
 0x149   :  { %v617_v36 = vadd.f32 %v616_v34, %v436_v33 }
 0x14b   :  { %v630_v37 = vadd.f32 %v629_v35, %v617_v36 }
 0x14d   :  { %v659_v39 = vmax.f32 %v630_v37, 0.0 }
 0x14f   :  { %v661_v40 = vpack.c.bf16 %v659_v39, %v659_v39  ;;  %v642_v41 = vpop.f32.mrf.mxu2  ;;  %v655_v42 = vpop.f32.mrf.mxu3 }
 0x150   :  { %v643_v43 = vadd.f32 %v642_v41, %v437_v38  ;;  %v618_v44 = vpop.f32.mrf.mxu0  ;;  %v631_v45 = vpop.f32.mrf.mxu1 }
 0x151   :  { %1214 = vmatmul.bf16.vlgmr.msrb.gmra.mxu2 %v661_v40 }
 0x152   :  { %v656_v46 = vadd.f32 %v655_v42, %v643_v43 }
 0x154   :  { %v660_v48 = vmax.f32 %v656_v46, 0.0 }
 0x156   :  { %v662_v50 = vpack.c.bf16 %v660_v48, %v660_v48 }
 0x157   :  { %v644_v51 = vpop.f32.mrf.mxu2  ;;  %v657_v52 = vpop.f32.mrf.mxu3 }
 0x158   :  { %1227 = vmatmul.bf16.vlgmr.msrb.gmra.mxu3 %v662_v50  ;;  %v877_v53 = vpop.f32.mrf.mxu0  ;;  %v890_v54 = vpop.f32.mrf.mxu1 }
 0x159   :  { %v878_v55 = vadd.f32 %v877_v53, %v697_v49 }
 0x15b   :  { %v891_v56 = vadd.f32 %v890_v54, %v878_v55 }
 0x15d   :  { %v920_v58 = vmax.f32 %v891_v56, 0.0 }
 0x15f   :  { %v922_v59 = vpack.c.bf16 %v920_v58, %v920_v58  ;;  %v903_v60 = vpop.f32.mrf.mxu2  ;;  %v916_v61 = vpop.f32.mrf.mxu3 }
 0x160   :  { %v904_v62 = vadd.f32 %v903_v60, %v698_v57  ;;  %v879_v63 = vpop.f32.mrf.mxu0  ;;  %v892_v0 = vpop.f32.mrf.mxu1 }
 0x161   :  { %1092 = vmatmul.bf16.vlgmr.msrb.gmra.mxu0 %v922_v59 }
 0x162   :  { %v917_v1 = vadd.f32 %v916_v61, %v904_v62 }
 0x164   :  { %v921_v2 = vmax.f32 %v917_v1, 0.0 }
 0x166   :  { %v923_v3 = vpack.c.bf16 %v921_v2, %v921_v2 }
 0x167   :  { %v905_v4 = vpop.f32.mrf.mxu2  ;;  %v918_v5 = vpop.f32.mrf.mxu3 }
 0x168   :  { %1105 = vmatmul.bf16.vlgmr.msrb.gmra.mxu1 %v923_v3 }
 0x1d4   :  { %v1215_v6 = vpop.f32.mrf.mxu2 }
 0x1db   :  { %v1228_v7 = vpop.f32.mrf.mxu3 }
 0x1dc   :  { %v1217_v8 = vpop.f32.mrf.mxu2 }
 0x1de   :  { %v1093_v9 = vpop.f32.mrf.mxu0 }
 0x1e3   :  { %v1230_v10 = vpop.f32.mrf.mxu3 }
 0x1e5   :  { %v1106_v11 = vpop.f32.mrf.mxu1 }
 0x1e6   :  { %v1107_v12 = vadd.f32 %v1106_v11, %v1093_v9  ;;  %v1095_v13 = vpop.f32.mrf.mxu0 }
 0x1e8   :  { %v1216_v14 = vadd.f32 %v1215_v6, %v1107_v12 }
 0x1ea   :  { %v1229_v16 = vadd.f32 %v1228_v7, %v1216_v14 }
 0x1ec   :  { %v1236_v17 = vadd.f32 %v1912_v15, %v1229_v16 }
 0x1ed   :  { %v1108_v18 = vpop.f32.mrf.mxu1 }
 0x1ee   :  { %1237 = vst [vmem:[#allocation14] sm:$0xff] %v1236_v17 }
 0x1ef   :  { %1248 = dma.vmem_to_hbm [thread:$0]  %s1244_s30, 128, %s1246_s13, [#allocation4]  }
 0x1f0   :  { %2113 = dma.done.wait [#allocation4], 128  }
 0x1f1   :  { %2114 = vsyncadd [#allocation4], 4294967168 }
 0x1f2   :  { %1253 = vsyncpa [#allocation3], 1 }
 0x1f3   :  { %1254 = vsyncpa [#allocation6], 1 }
 0x1f4   :  { %1255 = vsyncpa [#allocation9], 1 }
 0x1f5   :  { %1256 = vsyncpa [#allocation12], 1 }
 0x1f6   :  { %1257 = vsyncpa [#allocation4], 1 }

</bundles_post_ra>
